<compile_context>
chip_gen: v6e
topology: v6e:2x2x1
jax: 0.10.0
libtpu: 0.0.40
codegen_flags: <defaults>
</compile_context>

<pallas_src>
import jax
import jax.numpy as jnp
from jax.experimental import pallas as pl
from jax.experimental.pallas import tpu as pltpu


# ----------------------------------------------------------------------------
# Fused Pallas kernel: conv-GEMM + bias + ReLU + maxpool + Linear + log_softmax
# ----------------------------------------------------------------------------
def _fused_forward_kernel(patches_ref, wc_ref, bc_ref, wf_ref, bf_ref,
                          o_ref, feat_ref):
    # Shapes (static):
    #   patches_ref : (K=C*9, M=4*B*Ho*Wo)   columns = tap*(B*Ho*Wo) + b*Ho*Wo + s
    #   wc_ref      : (O, K)                 conv weight, PyTorch (C,kh,kw) flat order
    #   bc_ref      : (O, 1)
    #   wf_ref      : (O*Ho*Wo, NCLS)        fc weight pre-transposed
    #   bf_ref      : (1, NCLS)
    #   o_ref       : (B, NCLS)
    #   feat_ref    : (B, O*Ho*Wo)           VMEM scratch for flatten relayout
    B, F = feat_ref.shape
    O = wc_ref.shape[0]
    M = patches_ref.shape[1]
    N = M // 4          # B * Ho * Wo  (one pool-tap block, 128-lane aligned)
    S = F // O          # Ho * Wo      (spatial positions per channel)

    # Conv as GEMM, lane-dense output (O, M); bias broadcast over lanes; ReLU.
    acc = jnp.dot(wc_ref[...], patches_ref[...],
                  preferred_element_type=jnp.float32)
    acc = jnp.maximum(acc + bc_ref[...], 0.0)

    # 2x2 max-pool == elementwise max over the four 128-lane-aligned tap blocks.
    pooled = jnp.maximum(
        jnp.maximum(acc[:, 0:N], acc[:, N:2 * N]),
        jnp.maximum(acc[:, 2 * N:3 * N], acc[:, 3 * N:4 * N]),
    )  # (O, B*Ho*Wo), lane index = b*S + s

    # Relayout (channel-row, batch-in-lane) -> (batch-row, PyTorch flatten order
    # feature = c*Ho*Wo + s) via tiny static VMEM copies.
    for b in range(B):
        for c in range(O):
            feat_ref[b:b + 1, c * S:(c + 1) * S] = pooled[c:c + 1, b * S:(b + 1) * S]

    # Linear + numerically-stable log_softmax over the class axis.
    logits = jnp.dot(feat_ref[...], wf_ref[...],
                     preferred_element_type=jnp.float32) + bf_ref[...]
    m = jnp.max(logits, axis=-1, keepdims=True)
    z = logits - m
    lse = jnp.log(jnp.sum(jnp.exp(z), axis=-1, keepdims=True))
    o_ref[...] = (z - lse).astype(o_ref.dtype)


# ----------------------------------------------------------------------------
# JAX glue: im2col in the kernel's pool-friendly column order
# ----------------------------------------------------------------------------
def im2col_pool_layout(x):
    """x: (B, C, H, W) -> patchesT (C*9, 4*B*(H//2)*(W//2)).

    Row    = c*9 + dh*3 + dw        (matches PyTorch conv weight flattening)
    Column = (2*ph+pw)*(B*Ho*Wo) + b*(Ho*Wo) + ho*Wo + wo
             where conv output position is (h, w) = (2*ho+ph, 2*wo+pw).
    """
    B, C, H, W = x.shape
    Ho, Wo = H // 2, W // 2
    xp = jnp.pad(x, ((0, 0), (0, 0), (1, 1), (1, 1)))
    taps = jnp.stack(
        [xp[:, :, dh:dh + H, dw:dw + W] for dh in range(3) for dw in range(3)],
        axis=2,
    )                                              # (B, C, 9, H, W)
    t = taps.reshape(B, C, 9, Ho, 2, Wo, 2)        # (b, c, k, ho, ph, wo, pw)
    t = t.transpose(1, 2, 4, 6, 0, 3, 5)           # (c, k, ph, pw, b, ho, wo)
    return t.reshape(C * 9, 4 * B * Ho * Wo)


# ----------------------------------------------------------------------------
# Parameters
# ----------------------------------------------------------------------------
def init_params(key):
    """PyTorch-layout parameters (same init scheme as nn.Conv2d / nn.Linear)."""
    kcw, kcb, kfw, kfb = jax.random.split(key, 4)
    C_in, C_out, K = 4, 8, 3
    bound_c = 1.0 / jnp.sqrt(C_in * K * K)
    conv_w = jax.random.uniform(kcw, (C_out, C_in, K, K), jnp.float32,
                                -bound_c, bound_c)
    conv_b = jax.random.uniform(kcb, (C_out,), jnp.float32, -bound_c, bound_c)

    in_features, out_features = C_out * 8 * 8, 10
    bound_f = 1.0 / jnp.sqrt(in_features)
    fc_w = jax.random.uniform(kfw, (out_features, in_features), jnp.float32,
                              -bound_f, bound_f)
    fc_b = jax.random.uniform(kfb, (out_features,), jnp.float32, -bound_f, bound_f)
    return conv_w, conv_b, fc_w, fc_b


def prepare_params(conv_w, conv_b, fc_w, fc_b):
    """One-time conversion to kernel-ready layouts (hoisted out of forward)."""
    wc = conv_w.reshape(conv_w.shape[0], -1)   # (O, C*9)
    bc = conv_b.reshape(-1, 1)                 # (O, 1)
    wfT = fc_w.T                               # (in_features, 10)
    bf = fc_b.reshape(1, -1)                   # (1, 10)
    return wc, bc, wfT, bf


# ----------------------------------------------------------------------------
# Forward
# ----------------------------------------------------------------------------
@jax.jit
def model_forward(x, kparams):
    wc, bc, wfT, bf = kparams
    B = x.shape[0]
    ncls = wfT.shape[1]
    patchesT = im2col_pool_layout(x)           # (36, 4*B*Ho*Wo)

    return pl.pallas_call(
        _fused_forward_kernel,
        out_shape=jax.ShapeDtypeStruct((B, ncls), jnp.float32),
        grid=(1,),
        in_specs=[
            pl.BlockSpec(patchesT.shape, lambda i: (0, 0)),
            pl.BlockSpec(wc.shape, lambda i: (0, 0)),
            pl.BlockSpec(bc.shape, lambda i: (0, 0)),
            pl.BlockSpec(wfT.shape, lambda i: (0, 0)),
            pl.BlockSpec(bf.shape, lambda i: (0, 0)),
        ],
        out_specs=pl.BlockSpec((B, ncls), lambda i: (0, 0)),
        scratch_shapes=[pltpu.VMEM((B, wfT.shape[0]), jnp.float32)],
        compiler_params=pltpu.CompilerParams(
            dimension_semantics=("arbitrary",)),
    )(patchesT, wc, bc, wfT, bf)


# ----------------------------------------------------------------------------
# Pure-JAX reference (for self-check)
# ----------------------------------------------------------------------------
def reference_forward(x, conv_w, conv_b, fc_w, fc_b):
    y = jax.lax.conv_general_dilated(
        x, conv_w, window_strides=(1, 1), padding=((1, 1), (1, 1)),
        dimension_numbers=("NCHW", "OIHW", "NCHW"))
    y = jnp.maximum(y + conv_b.reshape(1, -1, 1, 1), 0.0)
    y = jax.lax.reduce_window(y, -jnp.inf, jax.lax.max,
                              (1, 1, 2, 2), (1, 1, 2, 2), "VALID")
    feats = y.reshape(y.shape[0], -1)
    logits = feats @ fc_w.T + fc_b
    return jax.nn.log_softmax(logits, axis=-1)


if __name__ == "__main__":
    key = jax.random.PRNGKey(0)
    kx, kp = jax.random.split(key)
    x = jax.random.normal(kx, (2, 4, 16, 16), jnp.float32)   # NCHW input

    torch_params = init_params(kp)
    kparams = prepare_params(*torch_params)

    out = model_forward(x, kparams)
    out = jax.block_until_ready(out)

    assert out.shape == (2, 10)
    # rows of log_softmax must sum (in prob space) to 1
    assert jnp.allclose(jnp.sum(jnp.exp(out), axis=1), 1.0, atol=1e-5)
    # match the un-fused pure-JAX reference of the PyTorch module
    ref = reference_forward(x, *torch_params)
    assert jnp.allclose(out, ref, atol=1e-4, rtol=1e-4)
    print("KERNEL_OK")
</pallas_src>

<mosaic_0001>
module attributes {stable_mosaic.version = 11 : i64} {
  func.func @_fused_forward_kernel(%arg0: i32, %arg1: memref<36x512xf32, #tpu.memory_space<vmem>>, %arg2: memref<8x36xf32, #tpu.memory_space<vmem>>, %arg3: memref<8x1xf32, #tpu.memory_space<vmem>>, %arg4: memref<512x10xf32, #tpu.memory_space<vmem>>, %arg5: memref<1x10xf32, #tpu.memory_space<vmem>>, %arg6: memref<2x10xf32, #tpu.memory_space<vmem>>, %arg7: memref<2x512xf32, #tpu.memory_space<vmem>>) attributes {dimension_semantics = [#tpu.dimension_semantics<arbitrary>], iteration_bounds = array<i64: 1>, scalar_prefetch = 0 : i64, scratch_operands = 1 : i64, tpu.core_type = #tpu.core_type<tc>, window_params = [{pipeline_mode = #tpu.pipeline_mode<synchronous>, transform_indices = @transform_0, window_bounds = array<i64: 36, 512>}, {pipeline_mode = #tpu.pipeline_mode<synchronous>, transform_indices = @transform_1, window_bounds = array<i64: 8, 36>}, {pipeline_mode = #tpu.pipeline_mode<synchronous>, transform_indices = @transform_2, window_bounds = array<i64: 8, 1>}, {pipeline_mode = #tpu.pipeline_mode<synchronous>, transform_indices = @transform_3, window_bounds = array<i64: 512, 10>}, {pipeline_mode = #tpu.pipeline_mode<synchronous>, transform_indices = @transform_4, window_bounds = array<i64: 1, 10>}, {pipeline_mode = #tpu.pipeline_mode<synchronous>, transform_indices = @transform_5, window_bounds = array<i64: 2, 10>}]} {
    %c0 = arith.constant 0 : index
    %c0_0 = arith.constant 0 : index
    %0 = vector.load %arg2[%c0, %c0_0] : memref<8x36xf32, #tpu.memory_space<vmem>>, vector<8x36xf32>
    %c0_1 = arith.constant 0 : index
    %c0_2 = arith.constant 0 : index
    %1 = vector.load %arg1[%c0_1, %c0_2] : memref<36x512xf32, #tpu.memory_space<vmem>>, vector<36x512xf32>
    %cst = arith.constant dense<0.000000e+00> : vector<8x512xf32>
    %2 = tpu.matmul %0, %1, %cst {dimension_numbers = #tpu.dot_dimension_numbers<[1], [0], [0], [1], [0, 0, 1, 1], [], []>} : vector<8x36xf32>, vector<36x512xf32>, vector<8x512xf32> -> vector<8x512xf32>
    %c0_3 = arith.constant 0 : index
    %c0_4 = arith.constant 0 : index
    %3 = vector.load %arg3[%c0_3, %c0_4] : memref<8x1xf32, #tpu.memory_space<vmem>>, vector<8x1xf32>
    %4 = vector.broadcast %3 : vector<8x1xf32> to vector<8x512xf32>
    %5 = arith.addf %2, %4 : vector<8x512xf32>
    %cst_5 = arith.constant 0.000000e+00 : f32
    %6 = vector.broadcast %cst_5 : f32 to vector<8x512xf32>
    %7 = arith.maximumf %5, %6 : vector<8x512xf32>
    %8 = vector.extract_strided_slice %7 {offsets = [0, 0], sizes = [8, 128], strides = [1, 1]} : vector<8x512xf32> to vector<8x128xf32>
    %9 = vector.extract_strided_slice %7 {offsets = [0, 128], sizes = [8, 128], strides = [1, 1]} : vector<8x512xf32> to vector<8x128xf32>
    %10 = arith.maximumf %8, %9 : vector<8x128xf32>
    %11 = vector.extract_strided_slice %7 {offsets = [0, 256], sizes = [8, 128], strides = [1, 1]} : vector<8x512xf32> to vector<8x128xf32>
    %12 = vector.extract_strided_slice %7 {offsets = [0, 384], sizes = [8, 128], strides = [1, 1]} : vector<8x512xf32> to vector<8x128xf32>
    %13 = arith.maximumf %11, %12 : vector<8x128xf32>
    %14 = arith.maximumf %10, %13 : vector<8x128xf32>
    %15 = vector.extract_strided_slice %14 {offsets = [0, 0], sizes = [1, 64], strides = [1, 1]} : vector<8x128xf32> to vector<1x64xf32>
    %c0_6 = arith.constant 0 : index
    %c0_7 = arith.constant 0 : index
    %16 = vector.load %arg7[%c0_6, %c0_7] : memref<2x512xf32, #tpu.memory_space<vmem>>, vector<1x64xf32>
    tpu.vector_store %arg7[%c0_6, %c0_7], %15 {strides = array<i32>} : memref<2x512xf32, #tpu.memory_space<vmem>>, vector<1x64xf32>,
    %17 = vector.extract_strided_slice %14 {offsets = [1, 0], sizes = [1, 64], strides = [1, 1]} : vector<8x128xf32> to vector<1x64xf32>
    %c0_8 = arith.constant 0 : index
    %c64 = arith.constant 64 : index
    %18 = vector.load %arg7[%c0_8, %c64] : memref<2x512xf32, #tpu.memory_space<vmem>>, vector<1x64xf32>
    tpu.vector_store %arg7[%c0_8, %c64], %17 {strides = array<i32>} : memref<2x512xf32, #tpu.memory_space<vmem>>, vector<1x64xf32>,
    %19 = vector.extract_strided_slice %14 {offsets = [2, 0], sizes = [1, 64], strides = [1, 1]} : vector<8x128xf32> to vector<1x64xf32>
    %c0_9 = arith.constant 0 : index
    %c128 = arith.constant 128 : index
    %20 = vector.load %arg7[%c0_9, %c128] : memref<2x512xf32, #tpu.memory_space<vmem>>, vector<1x64xf32>
    tpu.vector_store %arg7[%c0_9, %c128], %19 {strides = array<i32>} : memref<2x512xf32, #tpu.memory_space<vmem>>, vector<1x64xf32>,
    %21 = vector.extract_strided_slice %14 {offsets = [3, 0], sizes = [1, 64], strides = [1, 1]} : vector<8x128xf32> to vector<1x64xf32>
    %c0_10 = arith.constant 0 : index
    %c192 = arith.constant 192 : index
    %22 = vector.load %arg7[%c0_10, %c192] : memref<2x512xf32, #tpu.memory_space<vmem>>, vector<1x64xf32>
    tpu.vector_store %arg7[%c0_10, %c192], %21 {strides = array<i32>} : memref<2x512xf32, #tpu.memory_space<vmem>>, vector<1x64xf32>,
    %23 = vector.extract_strided_slice %14 {offsets = [4, 0], sizes = [1, 64], strides = [1, 1]} : vector<8x128xf32> to vector<1x64xf32>
    %c0_11 = arith.constant 0 : index
    %c256 = arith.constant 256 : index
    %24 = vector.load %arg7[%c0_11, %c256] : memref<2x512xf32, #tpu.memory_space<vmem>>, vector<1x64xf32>
    tpu.vector_store %arg7[%c0_11, %c256], %23 {strides = array<i32>} : memref<2x512xf32, #tpu.memory_space<vmem>>, vector<1x64xf32>,
    %25 = vector.extract_strided_slice %14 {offsets = [5, 0], sizes = [1, 64], strides = [1, 1]} : vector<8x128xf32> to vector<1x64xf32>
    %c0_12 = arith.constant 0 : index
    %c320 = arith.constant 320 : index
    %26 = vector.load %arg7[%c0_12, %c320] : memref<2x512xf32, #tpu.memory_space<vmem>>, vector<1x64xf32>
    tpu.vector_store %arg7[%c0_12, %c320], %25 {strides = array<i32>} : memref<2x512xf32, #tpu.memory_space<vmem>>, vector<1x64xf32>,
    %27 = vector.extract_strided_slice %14 {offsets = [6, 0], sizes = [1, 64], strides = [1, 1]} : vector<8x128xf32> to vector<1x64xf32>
    %c0_13 = arith.constant 0 : index
    %c384 = arith.constant 384 : index
    %28 = vector.load %arg7[%c0_13, %c384] : memref<2x512xf32, #tpu.memory_space<vmem>>, vector<1x64xf32>
    tpu.vector_store %arg7[%c0_13, %c384], %27 {strides = array<i32>} : memref<2x512xf32, #tpu.memory_space<vmem>>, vector<1x64xf32>,
    %29 = vector.extract_strided_slice %14 {offsets = [7, 0], sizes = [1, 64], strides = [1, 1]} : vector<8x128xf32> to vector<1x64xf32>
    %c0_14 = arith.constant 0 : index
    %c448 = arith.constant 448 : index
    %30 = vector.load %arg7[%c0_14, %c448] : memref<2x512xf32, #tpu.memory_space<vmem>>, vector<1x64xf32>
    tpu.vector_store %arg7[%c0_14, %c448], %29 {strides = array<i32>} : memref<2x512xf32, #tpu.memory_space<vmem>>, vector<1x64xf32>,
    %31 = vector.extract_strided_slice %14 {offsets = [0, 64], sizes = [1, 64], strides = [1, 1]} : vector<8x128xf32> to vector<1x64xf32>
    %c1 = arith.constant 1 : index
    %c0_15 = arith.constant 0 : index
    %32 = vector.load %arg7[%c1, %c0_15] : memref<2x512xf32, #tpu.memory_space<vmem>>, vector<1x64xf32>
    tpu.vector_store %arg7[%c1, %c0_15], %31 {strides = array<i32>} : memref<2x512xf32, #tpu.memory_space<vmem>>, vector<1x64xf32>,
    %33 = vector.extract_strided_slice %14 {offsets = [1, 64], sizes = [1, 64], strides = [1, 1]} : vector<8x128xf32> to vector<1x64xf32>
    %c1_16 = arith.constant 1 : index
    %c64_17 = arith.constant 64 : index
    %34 = vector.load %arg7[%c1_16, %c64_17] : memref<2x512xf32, #tpu.memory_space<vmem>>, vector<1x64xf32>
    tpu.vector_store %arg7[%c1_16, %c64_17], %33 {strides = array<i32>} : memref<2x512xf32, #tpu.memory_space<vmem>>, vector<1x64xf32>,
    %35 = vector.extract_strided_slice %14 {offsets = [2, 64], sizes = [1, 64], strides = [1, 1]} : vector<8x128xf32> to vector<1x64xf32>
    %c1_18 = arith.constant 1 : index
    %c128_19 = arith.constant 128 : index
    %36 = vector.load %arg7[%c1_18, %c128_19] : memref<2x512xf32, #tpu.memory_space<vmem>>, vector<1x64xf32>
    tpu.vector_store %arg7[%c1_18, %c128_19], %35 {strides = array<i32>} : memref<2x512xf32, #tpu.memory_space<vmem>>, vector<1x64xf32>,
    %37 = vector.extract_strided_slice %14 {offsets = [3, 64], sizes = [1, 64], strides = [1, 1]} : vector<8x128xf32> to vector<1x64xf32>
    %c1_20 = arith.constant 1 : index
    %c192_21 = arith.constant 192 : index
    %38 = vector.load %arg7[%c1_20, %c192_21] : memref<2x512xf32, #tpu.memory_space<vmem>>, vector<1x64xf32>
    tpu.vector_store %arg7[%c1_20, %c192_21], %37 {strides = array<i32>} : memref<2x512xf32, #tpu.memory_space<vmem>>, vector<1x64xf32>,
    %39 = vector.extract_strided_slice %14 {offsets = [4, 64], sizes = [1, 64], strides = [1, 1]} : vector<8x128xf32> to vector<1x64xf32>
    %c1_22 = arith.constant 1 : index
    %c256_23 = arith.constant 256 : index
    %40 = vector.load %arg7[%c1_22, %c256_23] : memref<2x512xf32, #tpu.memory_space<vmem>>, vector<1x64xf32>
    tpu.vector_store %arg7[%c1_22, %c256_23], %39 {strides = array<i32>} : memref<2x512xf32, #tpu.memory_space<vmem>>, vector<1x64xf32>,
    %41 = vector.extract_strided_slice %14 {offsets = [5, 64], sizes = [1, 64], strides = [1, 1]} : vector<8x128xf32> to vector<1x64xf32>
    %c1_24 = arith.constant 1 : index
    %c320_25 = arith.constant 320 : index
    %42 = vector.load %arg7[%c1_24, %c320_25] : memref<2x512xf32, #tpu.memory_space<vmem>>, vector<1x64xf32>
    tpu.vector_store %arg7[%c1_24, %c320_25], %41 {strides = array<i32>} : memref<2x512xf32, #tpu.memory_space<vmem>>, vector<1x64xf32>,
    %43 = vector.extract_strided_slice %14 {offsets = [6, 64], sizes = [1, 64], strides = [1, 1]} : vector<8x128xf32> to vector<1x64xf32>
    %c1_26 = arith.constant 1 : index
    %c384_27 = arith.constant 384 : index
    %44 = vector.load %arg7[%c1_26, %c384_27] : memref<2x512xf32, #tpu.memory_space<vmem>>, vector<1x64xf32>
    tpu.vector_store %arg7[%c1_26, %c384_27], %43 {strides = array<i32>} : memref<2x512xf32, #tpu.memory_space<vmem>>, vector<1x64xf32>,
    %45 = vector.extract_strided_slice %14 {offsets = [7, 64], sizes = [1, 64], strides = [1, 1]} : vector<8x128xf32> to vector<1x64xf32>
    %c1_28 = arith.constant 1 : index
    %c448_29 = arith.constant 448 : index
    %46 = vector.load %arg7[%c1_28, %c448_29] : memref<2x512xf32, #tpu.memory_space<vmem>>, vector<1x64xf32>
    tpu.vector_store %arg7[%c1_28, %c448_29], %45 {strides = array<i32>} : memref<2x512xf32, #tpu.memory_space<vmem>>, vector<1x64xf32>,
    %c0_30 = arith.constant 0 : index
    %c0_31 = arith.constant 0 : index
    %47 = vector.load %arg7[%c0_30, %c0_31] : memref<2x512xf32, #tpu.memory_space<vmem>>, vector<2x512xf32>
    %c0_32 = arith.constant 0 : index
    %c0_33 = arith.constant 0 : index
    %48 = vector.load %arg4[%c0_32, %c0_33] : memref<512x10xf32, #tpu.memory_space<vmem>>, vector<512x10xf32>
    %cst_34 = arith.constant dense<0.000000e+00> : vector<2x10xf32>
    %49 = tpu.matmul %47, %48, %cst_34 {dimension_numbers = #tpu.dot_dimension_numbers<[1], [0], [0], [1], [0, 0, 1, 1], [], []>} : vector<2x512xf32>, vector<512x10xf32>, vector<2x10xf32> -> vector<2x10xf32>
    %c0_35 = arith.constant 0 : index
    %c0_36 = arith.constant 0 : index
    %50 = vector.load %arg5[%c0_35, %c0_36] : memref<1x10xf32, #tpu.memory_space<vmem>>, vector<1x10xf32>
    %51 = vector.broadcast %50 : vector<1x10xf32> to vector<2x10xf32>
    %52 = arith.addf %49, %51 : vector<2x10xf32>
    %cst_37 = arith.constant dense<0xFF800000> : vector<2xf32>
    %53 = vector.multi_reduction <maximumf>, %52, %cst_37 [1] : vector<2x10xf32> to vector<2xf32>
    %54 = vector.shape_cast %53 : vector<2xf32> to vector<2x1xf32>
    %55 = vector.broadcast %54 : vector<2x1xf32> to vector<2x10xf32>
    %56 = arith.subf %52, %55 : vector<2x10xf32>
    %57 = math.exp %56 : vector<2x10xf32>
    %cst_38 = arith.constant dense<0.000000e+00> : vector<2xf32>
    %58 = vector.multi_reduction <add>, %57, %cst_38 [1] : vector<2x10xf32> to vector<2xf32>
    %59 = vector.shape_cast %58 : vector<2xf32> to vector<2x1xf32>
    %60 = math.log %59 : vector<2x1xf32>
    %61 = vector.broadcast %60 : vector<2x1xf32> to vector<2x10xf32>
    %62 = arith.subf %56, %61 : vector<2x10xf32>
    %c0_39 = arith.constant 0 : index
    %c0_40 = arith.constant 0 : index
    %63 = vector.load %arg6[%c0_39, %c0_40] : memref<2x10xf32, #tpu.memory_space<vmem>>, vector<2x10xf32>
    tpu.vector_store %arg6[%c0_39, %c0_40], %62 {strides = array<i32>} : memref<2x10xf32, #tpu.memory_space<vmem>>, vector<2x10xf32>,
    return
  }
  func.func @transform_0(%arg0: i32) -> (i32, i32) {
    %c0_i32 = arith.constant 0 : i32
    %c0_i32_0 = arith.constant 0 : i32
    %c0_i32_1 = arith.constant 0 : i32
    return %c0_i32, %c0_i32_0 : i32, i32
  }
  func.func @transform_1(%arg0: i32) -> (i32, i32) {
    %c0_i32 = arith.constant 0 : i32
    %c0_i32_0 = arith.constant 0 : i32
    %c0_i32_1 = arith.constant 0 : i32
    return %c0_i32, %c0_i32_0 : i32, i32
  }
  func.func @transform_2(%arg0: i32) -> (i32, i32) {
    %c0_i32 = arith.constant 0 : i32
    %c0_i32_0 = arith.constant 0 : i32
    %c0_i32_1 = arith.constant 0 : i32
    return %c0_i32, %c0_i32_0 : i32, i32
  }
  func.func @transform_3(%arg0: i32) -> (i32, i32) {
    %c0_i32 = arith.constant 0 : i32
    %c0_i32_0 = arith.constant 0 : i32
    %c0_i32_1 = arith.constant 0 : i32
    return %c0_i32, %c0_i32_0 : i32, i32
  }
  func.func @transform_4(%arg0: i32) -> (i32, i32) {
    %c0_i32 = arith.constant 0 : i32
    %c0_i32_0 = arith.constant 0 : i32
    %c0_i32_1 = arith.constant 0 : i32
    return %c0_i32, %c0_i32_0 : i32, i32
  }
  func.func @transform_5(%arg0: i32) -> (i32, i32) {
    %c0_i32 = arith.constant 0 : i32
    %c0_i32_0 = arith.constant 0 : i32
    %c0_i32_1 = arith.constant 0 : i32
    return %c0_i32, %c0_i32_0 : i32, i32
  }
}

</mosaic_0001>

<bundles_post_ra>
// kernel: model_forward.1
= control target key start
LH: loop header
LB: loop body
LE: loop exit
PB: predicated region body
PF: predicated region fallthrough
CT: control target
= control target key end

     0   :  { %vm52_vm0 = vcmask 1043456   ;;  %s993_s0 = inlined_call_operand.vmem [shape: f32[36,512], index: 0, kind: input, shape index: {}]   ;;  %s994_s1 = inlined_call_operand.vmem [shape: f32[8,36], index: 1, kind: input, shape index: {}]   ;;  %s995_s2 = inlined_call_operand.vmem [shape: f32[8,1], index: 2, kind: input, shape index: {}]   ;;  %s996_s3 = inlined_call_operand.vmem [shape: f32[512,10], index: 3, kind: input, shape index: {}]   ;;  %s997_s4 = inlined_call_operand.vmem [shape: f32[1,10], index: 4, kind: input, shape index: {}]   ;;  %s998_s5 = inlined_call_operand.hbm [shape: f32[2,10], index: 5, kind: output, shape index: {}]  }
   0x1   :  { %v39_v0 = vld [vmem:[%s993_s0 + $0x88] sm:$0xf]  ;;  %v41_v1 = vld [vmem:[%s993_s0 + $0x98] sm:$0xf]  ;;  %v38_v3 = vld [vmem:[%s993_s0 + $0x80] sm:$0xf] }
   0x2   :  { %v35_v2 = vld [vmem:[%s993_s0 + $0x68] sm:$0xff]  ;;  %551 = vmatprep.subr.msk.mxu0 %vm52_vm0, %v39_v0  ;;  %554 = vmatprep.subr.msk.mxu1 %vm52_vm0, %v41_v1  ;;  %v40_v4 = vld [vmem:[%s993_s0 + $0x90] sm:$0xf]  ;;  %v37_v5 = vld [vmem:[%s993_s0 + $0x78] sm:$0xff] }
   0x3   :  { %552 = vmatpush1.msk.msra.mxu0 %vm52_vm0, %v38_v3  ;;  %555 = vmatpush1.msk.msra.mxu1 %vm52_vm0, %v40_v4  ;;  %v34_v6 = vld [vmem:[%s993_s0 + $0x60] sm:$0xff]  ;;  %v36_v7 = vld [vmem:[%s993_s0 + $0x70] sm:$0xff]  ;;  %v31_v8 = vld [vmem:[%s993_s0 + $0x48] sm:$0xff] }
   0x4   :  { %89 = vmatprep.subr.mxu0 %v35_v2  ;;  %160 = vmatprep.subr.mxu1 %v37_v5  ;;  %v33_v9 = vld [vmem:[%s993_s0 + $0x58] sm:$0xff]  ;;  %v30_v10 = vld [vmem:[%s993_s0 + $0x40] sm:$0xff]  ;;  %v32_v11 = vld [vmem:[%s993_s0 + $0x50] sm:$0xff] }
   0x5   :  { %90 = vmatpush1.msra.mxu0 %v34_v6  ;;  %161 = vmatpush1.msra.mxu1 %v36_v7  ;;  %v27_v12 = vld [vmem:[%s993_s0 + $0x28] sm:$0xff]  ;;  %v29_v13 = vld [vmem:[%s993_s0 + $0x38] sm:$0xff]  ;;  %v26_v14 = vld [vmem:[%s993_s0 + $0x20] sm:$0xff] }
   0x6   :  { %91 = vmatprep.subr.mxu0 %v31_v8  ;;  %162 = vmatprep.subr.mxu1 %v33_v9  ;;  %v28_v15 = vld [vmem:[%s993_s0 + $0x30] sm:$0xff]  ;;  %v23_v16 = vld [vmem:[%s993_s0 + $0x8] sm:$0xff]  ;;  %v25_v17 = vld [vmem:[%s993_s0 + $0x18] sm:$0xff] }
   0x7   :  { %92 = vmatpush1.msra.mxu0 %v30_v10  ;;  %163 = vmatpush1.msra.mxu1 %v32_v11  ;;  %v22_v18 = vld [vmem:[%s993_s0] sm:$0xff] }
   0x8   :  { %93 = vmatprep.subr.mxu0 %v27_v12  ;;  %164 = vmatprep.subr.mxu1 %v29_v13 }
   0x9   :  { %10 = vsyncpa [#allocation4], 0  ;;  %94 = vmatpush1.msra.mxu0 %v26_v14  ;;  %165 = vmatpush1.msra.mxu1 %v28_v15  ;;  %v24_v19 = vld [vmem:[%s993_s0 + $0x10] sm:$0xff]  ;;  %v21_v20 = vld [vmem:[%s994_s1] sm:$0xff]  ;;  %vm48_vm1 = vcmask 293888   ;;  %v661_v21 = vmov 0.0   ;;  %v220_v35 = vlaneseq }
   0xa   :  { %95 = vmatprep.subr.mxu0 %v23_v16  ;;  %166 = vmatprep.subr.mxu1 %v25_v17  ;;  %v42_v22 = vld [vmem:[%s995_s2] sm:$0xff]  ;;  %v662_v23 = vmov 0   ;;  %v321_v24 = vld [vmem:[%s996_s3 + $0xf8] sm:$0xff]  ;;  %v320_v26 = vld [vmem:[%s996_s3 + $0xf0] sm:$0xff]  ;;  %v663_v33 = vmov 1983009808  }
   0xb   :  { %96 = vmatpush1.msra.mxu0 %v22_v18  ;;  %129 = vmatprep.mubr.f32.mxu0 %v661_v21  ;;  %v305_v25 = vld [vmem:[%s996_s3 + $0x78] sm:$0xff]  ;;  %v304_v28 = vld [vmem:[%s996_s3 + $0x70] sm:$0xff]  ;;  %v319_v30 = vld [vmem:[%s996_s3 + $0xe8] sm:$0xff]  ;;  %v218_v34 = vunpack.c.l.s4 %v663_v33  ;;  %v221_v53 = vshrl.u32 %v220_v35, 7  ;;  %vm214_vm2 = vcmask 516096   ;;  %s664_s25 = smov 64  }
   0xc   :  { %167 = vmatpush1.msra.mxu1 %v24_v19  ;;  %200 = vmatprep.mubr.f32.mxu1 %v661_v21  ;;  %v353_v27 = vld [vmem:[%s996_s3 + $0x1f8] sm:$0xff]  ;;  %v352_v31 = vld [vmem:[%s996_s3 + $0x1f0] sm:$0xff]  ;;  %v303_v36 = vld [vmem:[%s996_s3 + $0x68] sm:$0xff]  ;;  %vm229_vm3 = vcmask 1040896   ;;  %vm523_vm4 = vcmask 74752  }
   0xd   :  { %553 = vmatmul.mubr.msk.f32.vlgmr.msra.gmra.mxu0 %vm48_vm1, %v21_v20  ;;  %556 = vmatmul.mubr.msk.f32.vlgmr.msra.gmra.mxu1 %vm48_vm1, %v21_v20  ;;  %v337_v29 = vld [vmem:[%s996_s3 + $0x178] sm:$0xff]  ;;  %v336_v37 = vld [vmem:[%s996_s3 + $0x170] sm:$0xff]  ;;  %v318_v40 = vld [vmem:[%s996_s3 + $0xe0] sm:$0xff]  ;;  %v219_v52 = vunpack.c.0.s8 %v218_v34 }
   0xe   :  { %633 = vset.pattern.permute.xlu0 %v662_v23  ;;  %558 = vmatprep.subr.mxu0 %v321_v24  ;;  %v351_v41 = vld [vmem:[%s996_s3 + $0x1e8] sm:$0xff]  ;;  %v302_v44 = vld [vmem:[%s996_s3 + $0x60] sm:$0xff]  ;;  %v317_v48 = vld [vmem:[%s996_s3 + $0xd8] sm:$0xff] }
   0xf   :  { %45 = vperm.xlu0 %633, %v42_v22   ;;  %559 = vmatpush3.msra.mxu0 %v305_v25  ;;  %v335_v45 = vld [vmem:[%s996_s3 + $0x168] sm:$0xff]  ;;  %v350_v49 = vld [vmem:[%s996_s3 + $0x1e0] sm:$0xff]  ;;  %v301_v54 = vld [vmem:[%s996_s3 + $0x58] sm:$0xff]  ;;  %v834_v4 = vsub.s32 %v219_v52, %v221_v53 }
  0x10   :  { %593 = vmatprep.subr.mxu1 %v353_v27  ;;  %560 = vmatprep.subr.mxu0 %v320_v26  ;;  %v334_v55 = vld [vmem:[%s996_s3 + $0x160] sm:$0xff]  ;;  %v316_v56 = vld [vmem:[%s996_s3 + $0xd0] sm:$0xff]  ;;  %v349_v57 = vld [vmem:[%s996_s3 + $0x1d8] sm:$0xff] }
  0x11   :  { %594 = vmatpush3.msra.mxu1 %v337_v29  ;;  %561 = vmatpush3.msra.mxu0 %v304_v28  ;;  %v300_v62 = vld [vmem:[%s996_s3 + $0x50] sm:$0xff]  ;;  %v333_v63 = vld [vmem:[%s996_s3 + $0x158] sm:$0xff]  ;;  %v315_v0 = vld [vmem:[%s996_s3 + $0xc8] sm:$0xff] }
  0x12   :  { %595 = vmatprep.subr.mxu1 %v352_v31  ;;  %562 = vmatprep.subr.mxu0 %v319_v30  ;;  %v348_v1 = vld [vmem:[%s996_s3 + $0x1d0] sm:$0xff]  ;;  %v299_v5 = vld [vmem:[%s996_s3 + $0x48] sm:$0xff]  ;;  %v314_v7 = vld [vmem:[%s996_s3 + $0xc0] sm:$0xff] }
  0x13   :  { %563 = vmatpush3.msra.mxu0 %v303_v36  ;;  %596 = vmatpush3.msra.mxu1 %v336_v37  ;;  %v332_v6 = vld [vmem:[%s996_s3 + $0x150] sm:$0xff]  ;;  %v347_v8 = vld [vmem:[%s996_s3 + $0x1c8] sm:$0xff]  ;;  %v298_v10 = vld [vmem:[%s996_s3 + $0x40] sm:$0xff] }
  0x14   :  { %564 = vmatprep.subr.mxu0 %v318_v40  ;;  %597 = vmatprep.subr.mxu1 %v351_v41  ;;  %v331_v11 = vld [vmem:[%s996_s3 + $0x148] sm:$0xff]  ;;  %v313_v12 = vld [vmem:[%s996_s3 + $0xb8] sm:$0xff]  ;;  %v346_v13 = vld [vmem:[%s996_s3 + $0x1c0] sm:$0xff] }
  0x15   :  { %565 = vmatpush3.msra.mxu0 %v302_v44  ;;  %598 = vmatpush3.msra.mxu1 %v335_v45  ;;  %v297_v16 = vld [vmem:[%s996_s3 + $0x38] sm:$0xff]  ;;  %v330_v17 = vld [vmem:[%s996_s3 + $0x140] sm:$0xff]  ;;  %v312_v18 = vld [vmem:[%s996_s3 + $0xb0] sm:$0xff] }
  0x16   :  { %566 = vmatprep.subr.mxu0 %v317_v48  ;;  %599 = vmatprep.subr.mxu1 %v350_v49  ;;  %v345_v19 = vld [vmem:[%s996_s3 + $0x1b8] sm:$0xff]  ;;  %v296_v22 = vld [vmem:[%s996_s3 + $0x30] sm:$0xff]  ;;  %v311_v24 = vld [vmem:[%s996_s3 + $0xa8] sm:$0xff] }
  0x17   :  { %567 = vmatpush3.msra.mxu0 %v301_v54  ;;  %600 = vmatpush3.msra.mxu1 %v334_v55  ;;  %v329_v23 = vld [vmem:[%s996_s3 + $0x138] sm:$0xff]  ;;  %v344_v25 = vld [vmem:[%s996_s3 + $0x1b0] sm:$0xff]  ;;  %v295_v26 = vld [vmem:[%s996_s3 + $0x28] sm:$0xff] }
  0x18   :  { %568 = vmatprep.subr.mxu0 %v316_v56  ;;  %601 = vmatprep.subr.mxu1 %v349_v57  ;;  %v328_v29 = vld [vmem:[%s996_s3 + $0x130] sm:$0xff]  ;;  %v310_v30 = vld [vmem:[%s996_s3 + $0xa0] sm:$0xff]  ;;  %v343_v31 = vld [vmem:[%s996_s3 + $0x1a8] sm:$0xff] }
  0x19   :  { %569 = vmatpush3.msra.mxu0 %v300_v62  ;;  %602 = vmatpush3.msra.mxu1 %v333_v63  ;;  %v294_v33 = vld [vmem:[%s996_s3 + $0x20] sm:$0xff]  ;;  %v327_v34 = vld [vmem:[%s996_s3 + $0x128] sm:$0xff]  ;;  %v309_v35 = vld [vmem:[%s996_s3 + $0x98] sm:$0xff] }
  0x1a   :  { %570 = vmatprep.subr.mxu0 %v315_v0  ;;  %603 = vmatprep.subr.mxu1 %v348_v1  ;;  %v326_v40 = vld [vmem:[%s996_s3 + $0x120] sm:$0xff]  ;;  %v341_v44 = vld [vmem:[%s996_s3 + $0x198] sm:$0xff]  ;;  %v292_v45 = vld [vmem:[%s996_s3 + $0x10] sm:$0xff] }
  0x1b   :  { %571 = vmatpush3.msra.mxu0 %v299_v5  ;;  %604 = vmatpush3.msra.mxu1 %v332_v6  ;;  %v307_v48 = vld [vmem:[%s996_s3 + $0x88] sm:$0xff]  ;;  %v340_v49 = vld [vmem:[%s996_s3 + $0x190] sm:$0xff]  ;;  %v306_v53 = vld [vmem:[%s996_s3 + $0x80] sm:$0xff] }
  0x1c   :  { %572 = vmatprep.subr.mxu0 %v314_v7  ;;  %605 = vmatprep.subr.mxu1 %v347_v8  ;;  %v324_v52 = vld [vmem:[%s996_s3 + $0x110] sm:$0xff]  ;;  %v339_v54 = vld [vmem:[%s996_s3 + $0x188] sm:$0xff]  ;;  %v290_v55 = vld [vmem:[%s996_s3] sm:$0xff] }
  0x1d   :  { %573 = vmatpush3.msra.mxu0 %v298_v10  ;;  %606 = vmatpush3.msra.mxu1 %v331_v11  ;;  %v323_v56 = vld [vmem:[%s996_s3 + $0x108] sm:$0xff]  ;;  %v338_v57 = vld [vmem:[%s996_s3 + $0x180] sm:$0xff] }
  0x1e   :  { %574 = vmatprep.subr.mxu0 %v313_v12  ;;  %607 = vmatprep.subr.mxu1 %v346_v13  ;;  %v557_v11 = vld [vmem:[%s997_s4] ss:$0 sm:$0xff]  ;;  %s665_s4 = smov [#allocation3]  }
  0x1f   :  { %575 = vmatpush3.msra.mxu0 %v297_v16  ;;  %608 = vmatpush3.msra.mxu1 %v330_v17  ;;  %s543_s28 = sshll.u32 %s665_s4, 4  ;;  %s544_s28 = int_to_ptr.vmem [resolvable:$true] %s543_s28 }
  0x20   :  { %576 = vmatprep.subr.mxu0 %v312_v18  ;;  %609 = vmatprep.subr.mxu1 %v345_v19  ;;  %s639_s29 = scalar_lea.vmem %s544_s28, 32  ;;  %p644_p1 = scmp.lt.s32.totalorder %s544_s28, %s544_s28 }
  0x21   :  { %577 = vmatpush3.msra.mxu0 %v296_v22  ;;  %610 = vmatpush3.msra.mxu1 %v329_v23  ;;  %p640_p0 = scmp.ne.s32.totalorder %s544_s28, %s639_s29  ;;  %p645_p2 = scmp.lt.s32.totalorder %s639_s29, %s639_s29 }
  0x22   :  { %578 = vmatprep.subr.mxu0 %v311_v24  ;;  %611 = vmatprep.subr.mxu1 %v344_v25 }
  0x23   :  { %579 = vmatpush3.msra.mxu0 %v295_v26  ;;  %612 = vmatpush3.msra.mxu1 %v328_v29  ;;  %p646_p3 = por %p645_p2, %p644_p1 }
  0x24   :  { %580 = vmatprep.subr.mxu0 %v310_v30  ;;  %613 = vmatprep.subr.mxu1 %v343_v31 }
  0x25   :  { %581 = vmatpush3.msra.mxu0 %v294_v33  ;;  %614 = vmatpush3.msra.mxu1 %v327_v34  ;;  %p647_p4 = pnand %p646_p3, %p640_p0 }
  0x26   :  { %582 = vmatprep.subr.mxu0 %v309_v35 }
  0x8a   :  { %v46_v32 = vpop.permute.xlu0 %45 }
  0xcd   :  { %v131_v38 = vpop.f32.mrf.mxu0  ;;  %v202_v39 = vpop.f32.mrf.mxu1 }
  0xce   :  { %v132_v42 = vadd.f32 %v131_v38, %v46_v32  ;;  %v203_v43 = vadd.f32 %v202_v39, %v46_v32  ;;  %v342_v38 = vld [vmem:[%s996_s3 + $0x1a0] sm:$0xff]  ;;  %v293_v39 = vld [vmem:[%s996_s3 + $0x18] sm:$0xff] }
  0xcf   :  { %v133_v46 = vpop.f32.mrf.mxu0  ;;  %v204_v47 = vpop.f32.mrf.mxu1  ;;  %615 = vmatprep.subr.mxu1 %v342_v38  ;;  %583 = vmatpush3.msra.mxu0 %v293_v39 }
  0xd0   :  { %v134_v50 = vadd.f32 %v133_v46, %v46_v32  ;;  %v205_v51 = vadd.f32 %v204_v47, %v46_v32  ;;  %v207_v58 = vmax.f32 %v132_v42, 0.0  ;;  %v209_v59 = vmax.f32 %v203_v43, 0.0  ;;  %v308_v43 = vld [vmem:[%s996_s3 + $0x90] sm:$0xff]  ;;  %616 = vmatpush3.msra.mxu1 %v326_v40  ;;  %v325_v47 = vld [vmem:[%s996_s3 + $0x118] sm:$0xff] }
  0xd1   :  { %584 = vmatprep.subr.mxu0 %v308_v43  ;;  %617 = vmatprep.subr.mxu1 %v341_v44 }
  0xd2   :  { %v208_v60 = vmax.f32 %v134_v50, 0.0  ;;  %v210_v61 = vmax.f32 %v205_v51, 0.0  ;;  %585 = vmatpush3.msra.mxu0 %v292_v45  ;;  %v291_v51 = vld [vmem:[%s996_s3 + $0x8] sm:$0xff]  ;;  %618 = vmatpush3.msra.mxu1 %v325_v47 }
  0xd3   :  { %586 = vmatprep.subr.mxu0 %v307_v48  ;;  %619 = vmatprep.subr.mxu1 %v340_v49 }
  0xd4   :  { %v211_v2 = vmax.f32 %v207_v58, %v208_v60  ;;  %v212_v3 = vmax.f32 %v209_v59, %v210_v61  ;;  %587 = vmatpush3.msra.mxu0 %v291_v51  ;;  %620 = vmatpush3.msra.mxu1 %v324_v52  ;;  %v322_v58 = vld [vmem:[%s996_s3 + $0x100] sm:$0xff] }
  0xd5   :  { %588 = vmatprep.subr.mxu0 %v306_v53  ;;  %621 = vmatprep.subr.mxu1 %v339_v54 }
  0xd6   :  { %v213_v9 = vmax.f32 %v211_v2, %v212_v3  ;;  %589 = vmatpush3.msra.mxu0 %v290_v55  ;;  %622 = vmatpush3.msra.mxu1 %v323_v56 }
  0xd7   :  { %623 = vmatprep.subr.mxu1 %v338_v57 }
  0xd8   :  { %v240_v14 = vcombine.high %v213_v9, %v213_v9  ;;  %v223_v15 = vrot.slane %v213_v9, %v834_v4  ;;  %215 = vst.msk [vmem:[#allocation2] sm:$0x1] %vm214_vm2, %v213_v9  ;;  %624 = vmatpush3.msra.mxu1 %v322_v58 }
  0xda   :  { %v247_v20 = vrot.slane %v240_v14, %v834_v4  ;;  %265 = vrot.lane.b32.xlu0 %v223_v15, %s664_s25  ;;  %v231_v21 = vcombine.high %v223_v15, %v223_v15  ;;  %v224_v32 = vrot.slane %v223_v15, 7 }
  0xdc   :  { %271 = vrot.lane.b32.xlu1 %v231_v21, %s664_s25  ;;  %v256_v27 = vcombine.high %v247_v20, %v247_v20  ;;  %v234_v28 = vrot.slane %v231_v21, 7  ;;  %233 = vst.msk [vmem:[#allocation2 + $0x2] sm:$0x1] %vm214_vm2, %v231_v21  ;;  %249 = vst.msk [vmem:[#allocation2 + $0x4] sm:$0x1] %vm214_vm2, %v247_v20  ;;  %v225_v41 = vrot.slane %v224_v32, 2 }
  0xdd   :  { %v250_v42 = vrot.slane %v247_v20, 7 }
  0xde   :  { %283 = vrot.lane.b32.xlu0 %v256_v27, %s664_s25  ;;  %258 = vst.msk [vmem:[#allocation2 + $0x6] sm:$0x1] %vm214_vm2, %v256_v27  ;;  %v235_v36 = vrot.slane %v234_v28, 2  ;;  %v259_v37 = vrot.slane %v256_v27, 7 }
  0xdf   :  { %v251_v50 = vrot.slane %v250_v42, 2 }
  0xe0   :  { %277 = vrot.lane.b32.xlu1 %v247_v20, %s664_s25  ;;  %v260_v46 = vrot.slane %v259_v37, 2 }
  0xe2   :  { %236 = vrot.lane.b32.xlu0 %v235_v36, %s664_s25 }
  0xe4   :  { %226 = vrot.lane.b32.xlu1 %v225_v41, %s664_s25 }
  0xe6   :  { %261 = vrot.lane.b32.xlu0 %v260_v46, %s664_s25 }
  0xe8   :  { %252 = vrot.lane.b32.xlu1 %v251_v50, %s664_s25 }
 0x14c   :  { %v266_v59 = vpop.permute.xlu0 %265 }
 0x14d   :  { %268 = vst.msk [vmem:[#allocation2 + $0x1] sm:$0x1] %vm214_vm2, %v266_v59 }
 0x14e   :  { %270 = vst.msk [vmem:[#allocation2 + $0x1] sm:$0x1] %vm229_vm3, %v225_v41  ;;  %v272_v60 = vpop.permute.xlu1 %271 }
 0x14f   :  { %274 = vst.msk [vmem:[#allocation2 + $0x3] sm:$0x1] %vm214_vm2, %v272_v60 }
 0x150   :  { %276 = vst.msk [vmem:[#allocation2 + $0x3] sm:$0x1] %vm229_vm3, %v235_v36  ;;  %v284_v61 = vpop.permute.xlu0 %283 }
 0x151   :  { %286 = vst.msk [vmem:[#allocation2 + $0x7] sm:$0x1] %vm214_vm2, %v284_v61 }
 0x152   :  { %288 = vst.msk [vmem:[#allocation2 + $0x7] sm:$0x1] %vm229_vm3, %v260_v46  ;;  %v278_v62 = vpop.permute.xlu1 %277 }
 0x153   :  { %280 = vst.msk [vmem:[#allocation2 + $0x5] sm:$0x1] %vm214_vm2, %v278_v62 }
 0x154   :  { %282 = vst.msk [vmem:[#allocation2 + $0x5] sm:$0x1] %vm229_vm3, %v251_v50  ;;  %v237_v63 = vpop.permute.xlu0 %236 }
 0x155   :  { %239 = vst.msk [vmem:[#allocation2 + $0x2] sm:$0x1] %vm229_vm3, %v237_v63 }
 0x156   :  { %v227_v0 = vpop.permute.xlu1 %226 }
 0x157   :  { %230 = vst.msk [vmem:[#allocation2] sm:$0x1] %vm229_vm3, %v227_v0 }
 0x158   :  { %v262_v1 = vpop.permute.xlu0 %261 }
 0x159   :  { %264 = vst.msk [vmem:[#allocation2 + $0x6] sm:$0x1] %vm229_vm3, %v262_v1 }
 0x15a   :  { %v253_v2 = vpop.permute.xlu1 %252 }
 0x15b   :  { %255 = vst.msk [vmem:[#allocation2 + $0x4] sm:$0x1] %vm229_vm3, %v253_v2 }
 0x162   :  { %v289_v3 = vld [vmem:[#allocation2] sm:$0xff] }
 0x163   :  { %v369_v5 = vrot.slane %v289_v3, %v834_v4  ;;  %v362_v6 = vcombine.high %v289_v3, %v289_v3 }
 0x165   :  { %v377_v7 = vcombine.high %v369_v5, %v369_v5  ;;  %v376_v8 = vrot.slane %v362_v6, %v834_v4 }
 0x167   :  { %447 = vmatprep.mubr.f32.mxu0 %v377_v7  ;;  %v378_v9 = vcombine.high %v376_v8, %v376_v8 }
 0x168   :  { %448 = vmatmul.mubr.f32.vlgmr.msra.gmra.mxu0 %v369_v5 }
 0x169   :  { %517 = vmatprep.mubr.f32.mxu1 %v378_v9 }
 0x16a   :  { %518 = vmatmul.mubr.f32.vlgmr.msra.gmra.mxu1 %v376_v8 }
 0x228   :  { %v590_v10 = vpop.f32.mrf.mxu0 }
 0x22a   :  { %v591_v12 = vpop.f32.mrf.mxu0  ;;  %v625_v13 = vpop.f32.mrf.mxu1 }
 0x22b   :  { %v592_v14 = vadd.f32 %v591_v12, %v590_v10 }
 0x22c   :  { %v626_v15 = vpop.f32.mrf.mxu1 }
 0x22d   :  { %v450_v16 = vadd.f32 %v592_v14, %v557_v11  ;;  %v627_v17 = vadd.f32 %v626_v15, %v625_v13 }
 0x22f   :  { %v520_v18 = vadd.f32 %v627_v17, %v450_v16 }
 0x231   :  { %v524_v4 = vsel %vm523_vm4, %v520_v18, -inf }
 0x232   :  { %525 = vmax.xlane.f32.xlu1 %v524_v4 }
 0x2bb   :  { %v526_v19 = vpop.xlane.xlu1 %525 }
 0x2bc   :  { %v527_v20 = vsub.f32 %v520_v18, %v526_v19 }
 0x2be   :  { %v528_v21 = vmul.f32 1.442695, %v527_v20 }
 0x2c0   :  { %635 = vpow2.f32 %v528_v21 }
 0x2cd   :  { %v636_v22 = vpop.eup %635 }
 0x2ce   :  { %v530_v23 = vsel %vm523_vm4, %v636_v22, 0.0 }
 0x2cf   :  { %531 = vadd.xlane.f32.xlu0 %v530_v23 }
 0x358   :  { %v532_v24 = vpop.xlane.xlu0 %531 }
 0x359   :  { %637 = vlog2.f32 %v532_v24 }
 0x366   :  { %v638_v25 = vpop.eup %637 }
 0x367   :  { %v534_v26 = vmul.f32 0.6931472, %v638_v25 }
 0x369   :  { %v535_v27 = vsub.f32 %v527_v20, %v534_v26 }
 0x36b   :  { %536 = vst.msk [vmem:[#allocation3] sm:$0x3] %vm523_vm4, %v535_v27 }
 0x36c   :  { %650 = shalt.err (!%p647_p4)
}
 0x36d   :  { %546 = dma.vmem_to_hbm [thread:$0]  %s544_s28, 32, %s998_s5, [#allocation4]  }
 0x36e   :  { %659 = dma.done.wait [#allocation4], 32  }
 0x36f   :  { %660 = vsyncadd [#allocation4], 4294967264 }
 0x370   :  { %550 = vsyncpa [#allocation4], 1 }

</bundles_post_ra>
